<compile_context>
chip_gen: v5e
topology: v5e:2x2
jax: 0.10.0
libtpu: 0.0.40
codegen_flags: <defaults>
</compile_context>

<pallas_src>
import math
import functools

import jax
import jax.numpy as jnp
from jax import lax
from jax.experimental import pallas as pl
from jax.experimental.pallas import tpu as pltpu

_MASK_VALUE = -1000000.0  # matches PyTorch sequence_mask(value=-1000000.0)
_LANE = 128
_SUBLANE = 8


def _round_up(x, m):
    return ((x + m - 1) // m) * m


def _attn_kernel(vl_ref, q_ref, k_ref, v_ref, o_ref, m_sc, l_sc, acc_sc, *,
                 scale, tk, nk, nk_pad, use_mask):
    """Grid = (B, Nq/TQ, Nk/TK); online softmax accumulated over the K axis.

    vl_ref : SMEM (B,) int32 (scalar-prefetched valid lengths)
    q_ref  : VMEM (1, TQ, Dp)     k_ref : VMEM (1, TK, Dp)
    v_ref  : VMEM (1, TK, Dvp)    o_ref : VMEM (1, TQ, Dvp)
    m_sc   : VMEM (TQ, 1) running max      l_sc : VMEM (TQ, 1) running denom
    acc_sc : VMEM (TQ, Dvp) unnormalized output accumulator
    """
    b = pl.program_id(0)
    ki = pl.program_id(2)
    nkt = pl.num_programs(2)
    start = ki * tk

    @pl.when(ki == 0)
    def _init():
        m_sc[...] = jnp.full(m_sc.shape, -jnp.inf, dtype=m_sc.dtype)
        l_sc[...] = jnp.zeros(l_sc.shape, dtype=l_sc.dtype)
        acc_sc[...] = jnp.zeros(acc_sc.shape, dtype=acc_sc.dtype)

    vl = vl_ref[b] if use_mask else None

    def _body():
        # Fold 1/sqrt(d) into Q (TQ*D mults instead of TQ*TK on the scores).
        q = q_ref[0] * scale
        k = k_ref[0]
        v = v_ref[0]
        # Q @ K^T expressed as a contraction on K's last dim (no XLU transpose).
        s = lax.dot_general(q, k, (((1,), (1,)), ((), ())),
                            preferred_element_type=jnp.float32)      # (TQ, TK)
        if use_mask or nk_pad != nk:
            col = lax.broadcasted_iota(jnp.int32, s.shape, 1) + start
            if use_mask:
                s = jnp.where(col < vl, s, _MASK_VALUE)
            if nk_pad != nk:
                # Zero-padded key rows must never contribute (even when vl == 0).
                s = jnp.where(col < nk, s, -jnp.inf)

        m_prev = m_sc[...]
        m_new = jnp.maximum(m_prev, jnp.max(s, axis=-1, keepdims=True))
        alpha = jnp.exp(m_prev - m_new)
        p = jnp.exp(s - m_new)
        l_sc[...] = alpha * l_sc[...] + jnp.sum(p, axis=-1, keepdims=True)
        acc_sc[...] = alpha * acc_sc[...] + jnp.dot(
            p.astype(v.dtype), v, preferred_element_type=jnp.float32)
        m_sc[...] = m_new

    if use_mask:
        # Fully-masked K tiles contribute exactly zero weight -> skip them.
        # vl == 0 must still run every tile (uniform weights, as in PyTorch).
        pl.when(jnp.logical_or(vl > start, vl == 0))(_body)
    else:
        _body()

    @pl.when(ki == nkt - 1)
    def _done():
        # Deferred normalization: divide only the (TQ, Dv) output tile.
        o_ref[0] = (acc_sc[...] / l_sc[...]).astype(o_ref.dtype)


def dot_product_attention(queries, keys, values, valid_lens=None, *,
                          tq=128, tk=256):
    """Pallas equivalent of DotProductAttention.forward (eval mode)."""
    B, Nq, D = queries.shape
    Bk, Nk, Dk = keys.shape
    Bv, Nkv, Dv = values.shape
    assert (Bk, Dk) == (B, D) and (Bv, Nkv) == (B, Nk)

    use_mask = valid_lens is not None
    if use_mask:
        if valid_lens.ndim != 1:
            # TODO(synk): 2-D per-query valid_lens (as masked_softmax allows) unsupported.
            raise NotImplementedError("only 1-D per-batch valid_lens is supported")
        vl = valid_lens.astype(jnp.int32)
    else:
        vl = jnp.full((B,), Nk, dtype=jnp.int32)  # unused by kernel (use_mask=False)

    scale = 1.0 / math.sqrt(D)  # scale uses the ORIGINAL head dim, before padding

    # Lane-dense feature dims (>=128) and sublane-aligned tiles.
    d_pad = _round_up(D, _LANE)
    dv_pad = _round_up(Dv, _LANE)
    TQ = min(tq, _round_up(Nq, _SUBLANE))
    TK = min(tk, _round_up(Nk, _SUBLANE))
    nq_pad = _round_up(Nq, TQ)
    nk_pad = _round_up(Nk, TK)

    def _pad(x, n_to, f_to):
        _, n, f = x.shape
        if n == n_to and f == f_to:
            return x
        return jnp.pad(x, ((0, 0), (0, n_to - n), (0, f_to - f)))

    q_p = _pad(queries, nq_pad, d_pad)
    k_p = _pad(keys, nk_pad, d_pad)
    v_p = _pad(values, nk_pad, dv_pad)

    kernel = functools.partial(_attn_kernel, scale=scale, tk=TK, nk=Nk,
                               nk_pad=nk_pad, use_mask=use_mask)

    grid = (B, nq_pad // TQ, nk_pad // TK)
    grid_spec = pltpu.PrefetchScalarGridSpec(
        num_scalar_prefetch=1,  # valid_lens lands in SMEM
        grid=grid,
        in_specs=[
            pl.BlockSpec((1, TQ, d_pad), lambda b, qi, ki, vl_ref: (b, qi, 0)),
            pl.BlockSpec((1, TK, d_pad), lambda b, qi, ki, vl_ref: (b, ki, 0)),
            pl.BlockSpec((1, TK, dv_pad), lambda b, qi, ki, vl_ref: (b, ki, 0)),
        ],
        out_specs=pl.BlockSpec((1, TQ, dv_pad), lambda b, qi, ki, vl_ref: (b, qi, 0)),
        scratch_shapes=[
            pltpu.VMEM((TQ, 1), jnp.float32),        # running max
            pltpu.VMEM((TQ, 1), jnp.float32),        # running denominator
            pltpu.VMEM((TQ, dv_pad), jnp.float32),   # output accumulator
        ],
    )

    out = pl.pallas_call(
        kernel,
        out_shape=jax.ShapeDtypeStruct((B, nq_pad, dv_pad), queries.dtype),
        grid_spec=grid_spec,
        compiler_params=pltpu.CompilerParams(
            dimension_semantics=("parallel", "parallel", "arbitrary")),
    )(vl, q_p, k_p, v_p)

    if nq_pad != Nq or dv_pad != Dv:
        out = out[:, :Nq, :Dv]
    return out


def _reference(queries, keys, values, valid_lens):
    """Pure-JAX reference mirroring the PyTorch forward (eval mode)."""
    d = queries.shape[-1]
    scores = jnp.einsum("bqd,bkd->bqk", queries, keys) / math.sqrt(d)
    if valid_lens is not None:
        col = jnp.arange(scores.shape[-1])[None, None, :]
        scores = jnp.where(col < valid_lens[:, None, None], scores, _MASK_VALUE)
    w = jax.nn.softmax(scores, axis=-1)
    return jnp.einsum("bqk,bkv->bqv", w, values)


if __name__ == "__main__":
    # --- small shapes (matching the module docstring) ---
    kq, kk, kv = jax.random.split(jax.random.PRNGKey(0), 3)
    B, Nq, Nk, D, Dv = 2, 8, 8, 32, 32
    queries = jax.random.normal(kq, (B, Nq, D), dtype=jnp.float32)
    keys_ = jax.random.normal(kk, (B, Nk, D), dtype=jnp.float32)
    values = jax.random.normal(kv, (B, Nk, Dv), dtype=jnp.float32)
    valid_lens = jnp.array([3, 6], dtype=jnp.int32)

    out = jax.block_until_ready(dot_product_attention(queries, keys_, values, valid_lens))
    ref = _reference(queries, keys_, values, valid_lens)
    assert out.shape == (B, Nq, Dv)
    assert jnp.allclose(out, ref, atol=2e-5, rtol=2e-5), "mismatch vs reference (masked)"

    out2 = jax.block_until_ready(dot_product_attention(queries, keys_, values, None))
    ref2 = _reference(queries, keys_, values, None)
    assert jnp.allclose(out2, ref2, atol=2e-5, rtol=2e-5), "mismatch vs reference (no mask)"

    # --- larger shapes exercising Q/K tiling, online softmax, and padding ---
    kq2, kk2, kv2 = jax.random.split(jax.random.PRNGKey(1), 3)
    B2, Nq2, Nk2, D2, Dv2 = 2, 200, 384, 64, 64
    q2 = jax.random.normal(kq2, (B2, Nq2, D2), dtype=jnp.float32)
    k2 = jax.random.normal(kk2, (B2, Nk2, D2), dtype=jnp.float32)
    v2 = jax.random.normal(kv2, (B2, Nk2, Dv2), dtype=jnp.float32)
    vl2 = jnp.array([100, 384], dtype=jnp.int32)

    out3 = jax.block_until_ready(dot_product_attention(q2, k2, v2, vl2))
    ref3 = _reference(q2, k2, v2, vl2)
    assert out3.shape == (B2, Nq2, Dv2)
    assert jnp.allclose(out3, ref3, atol=1e-4, rtol=1e-4), "mismatch vs reference (tiled)"

    print("KERNEL_OK")
</pallas_src>

<mosaic_0001>
module attributes {stable_mosaic.version = 11 : i64} {
  func.func @_attn_kernel(%arg0: i32, %arg1: i32, %arg2: i32, %arg3: memref<2xi32, #tpu.memory_space<smem>>, %arg4: memref<1x8x128xf32, #tpu.memory_space<vmem>>, %arg5: memref<1x8x128xf32, #tpu.memory_space<vmem>>, %arg6: memref<1x8x128xf32, #tpu.memory_space<vmem>>, %arg7: memref<1x8x128xf32, #tpu.memory_space<vmem>>, %arg8: memref<8x1xf32, #tpu.memory_space<vmem>>, %arg9: memref<8x1xf32, #tpu.memory_space<vmem>>, %arg10: memref<8x128xf32, #tpu.memory_space<vmem>>) attributes {dimension_semantics = [#tpu.dimension_semantics<parallel>, #tpu.dimension_semantics<parallel>, #tpu.dimension_semantics<arbitrary>], iteration_bounds = array<i64: 2, 1, 1>, scalar_prefetch = 1 : i64, scratch_operands = 3 : i64, tpu.core_type = #tpu.core_type<tc>, window_params = [{transform_indices = @transform_0, window_bounds = array<i64: 1, 8, 128>}, {transform_indices = @transform_1, window_bounds = array<i64: 1, 8, 128>}, {transform_indices = @transform_2, window_bounds = array<i64: 1, 8, 128>}, {transform_indices = @transform_3, window_bounds = array<i64: 1, 8, 128>}]} {
    %c8_i32 = arith.constant 8 : i32
    %0 = arith.muli %arg2, %c8_i32 : i32
    %c0_i32 = arith.constant 0 : i32
    %1 = arith.cmpi eq, %arg2, %c0_i32 : i32
    %2 = arith.extui %1 : i1 to i32
    %c0_i32_0 = arith.constant 0 : i32
    %3 = arith.cmpi ne, %2, %c0_i32_0 : i32
    scf.if %3 {
      %cst = arith.constant 0xFF800000 : f32
      %14 = vector.broadcast %cst : f32 to vector<8x1xf32>
      %c0 = arith.constant 0 : index
      %c0_5 = arith.constant 0 : index
      %15 = vector.load %arg8[%c0, %c0_5] : memref<8x1xf32, #tpu.memory_space<vmem>>, vector<8x1xf32>
      tpu.vector_store %arg8[%c0, %c0_5], %14 {strides = array<i32>} : memref<8x1xf32, #tpu.memory_space<vmem>>, vector<8x1xf32>,
      %cst_6 = arith.constant 0.000000e+00 : f32
      %16 = vector.broadcast %cst_6 : f32 to vector<8x1xf32>
      %c0_7 = arith.constant 0 : index
      %c0_8 = arith.constant 0 : index
      %17 = vector.load %arg9[%c0_7, %c0_8] : memref<8x1xf32, #tpu.memory_space<vmem>>, vector<8x1xf32>
      tpu.vector_store %arg9[%c0_7, %c0_8], %16 {strides = array<i32>} : memref<8x1xf32, #tpu.memory_space<vmem>>, vector<8x1xf32>,
      %cst_9 = arith.constant 0.000000e+00 : f32
      %18 = vector.broadcast %cst_9 : f32 to vector<8x128xf32>
      %c0_10 = arith.constant 0 : index
      %c0_11 = arith.constant 0 : index
      %19 = vector.load %arg10[%c0_10, %c0_11] : memref<8x128xf32, #tpu.memory_space<vmem>>, vector<8x128xf32>
      tpu.vector_store %arg10[%c0_10, %c0_11], %18 {strides = array<i32>} : memref<8x128xf32, #tpu.memory_space<vmem>>, vector<8x128xf32>,
    } else {
    }
    %4 = arith.index_cast %arg0 : i32 to index
    %5 = memref.load %arg3[%4] : memref<2xi32, #tpu.memory_space<smem>>
    %6 = arith.cmpi sgt, %5, %0 : i32
    %c0_i32_1 = arith.constant 0 : i32
    %7 = arith.cmpi eq, %5, %c0_i32_1 : i32
    %8 = arith.ori %6, %7 : i1
    %9 = arith.extui %8 : i1 to i32
    %c0_i32_2 = arith.constant 0 : i32
    %10 = arith.cmpi ne, %9, %c0_i32_2 : i32
    scf.if %10 {
      %c0 = arith.constant 0 : index
      %c0_5 = arith.constant 0 : index
      %c0_6 = arith.constant 0 : index
      %14 = vector.load %arg4[%c0, %c0_5, %c0_6] : memref<1x8x128xf32, #tpu.memory_space<vmem>>, vector<1x8x128xf32>
      %15 = vector.shape_cast %14 : vector<1x8x128xf32> to vector<8x128xf32>
      %cst = arith.constant 0.176776692 : f32
      %16 = vector.broadcast %cst : f32 to vector<8x128xf32>
      %17 = arith.mulf %15, %16 : vector<8x128xf32>
      %c0_7 = arith.constant 0 : index
      %c0_8 = arith.constant 0 : index
      %c0_9 = arith.constant 0 : index
      %18 = vector.load %arg5[%c0_7, %c0_8, %c0_9] : memref<1x8x128xf32, #tpu.memory_space<vmem>>, vector<1x8x128xf32>
      %19 = vector.shape_cast %18 : vector<1x8x128xf32> to vector<8x128xf32>
      %c0_10 = arith.constant 0 : index
      %c0_11 = arith.constant 0 : index
      %c0_12 = arith.constant 0 : index
      %20 = vector.load %arg6[%c0_10, %c0_11, %c0_12] : memref<1x8x128xf32, #tpu.memory_space<vmem>>, vector<1x8x128xf32>
      %21 = vector.shape_cast %20 : vector<1x8x128xf32> to vector<8x128xf32>
      %cst_13 = arith.constant dense<0.000000e+00> : vector<8x8xf32>
      %22 = tpu.matmul %17, %19, %cst_13 {dimension_numbers = #tpu.dot_dimension_numbers<[1], [1], [0], [0], [0, 0, 1, 0], [], []>} : vector<8x128xf32>, vector<8x128xf32>, vector<8x8xf32> -> vector<8x8xf32>
      %23 = tpu.iota {dimensions = array<i32: 1>} : vector<8x8xi32>
      %24 = vector.broadcast %0 : i32 to vector<8x8xi32>
      %25 = arith.addi %23, %24 : vector<8x8xi32>
      %26 = vector.broadcast %5 : i32 to vector<8x8xi32>
      %27 = arith.cmpi slt, %25, %26 : vector<8x8xi32>
      %cst_14 = arith.constant -1.000000e+06 : f32
      %28 = vector.broadcast %cst_14 : f32 to vector<8x8xf32>
      %29 = arith.select %27, %22, %28 : vector<8x8xi1>, vector<8x8xf32>
      %c0_15 = arith.constant 0 : index
      %c0_16 = arith.constant 0 : index
      %30 = vector.load %arg8[%c0_15, %c0_16] : memref<8x1xf32, #tpu.memory_space<vmem>>, vector<8x1xf32>
      %cst_17 = arith.constant dense<0xFF800000> : vector<8xf32>
      %31 = vector.multi_reduction <maximumf>, %29, %cst_17 [1] : vector<8x8xf32> to vector<8xf32>
      %32 = vector.shape_cast %31 : vector<8xf32> to vector<8x1xf32>
      %33 = arith.maximumf %30, %32 : vector<8x1xf32>
      %34 = arith.subf %30, %33 : vector<8x1xf32>
      %35 = math.exp %34 : vector<8x1xf32>
      %36 = vector.broadcast %33 : vector<8x1xf32> to vector<8x8xf32>
      %37 = arith.subf %29, %36 : vector<8x8xf32>
      %38 = math.exp %37 : vector<8x8xf32>
      %c0_18 = arith.constant 0 : index
      %c0_19 = arith.constant 0 : index
      %39 = vector.load %arg9[%c0_18, %c0_19] : memref<8x1xf32, #tpu.memory_space<vmem>>, vector<8x1xf32>
      %40 = arith.mulf %35, %39 : vector<8x1xf32>
      %cst_20 = arith.constant dense<0.000000e+00> : vector<8xf32>
      %41 = vector.multi_reduction <add>, %38, %cst_20 [1] : vector<8x8xf32> to vector<8xf32>
      %42 = vector.shape_cast %41 : vector<8xf32> to vector<8x1xf32>
      %43 = arith.addf %40, %42 : vector<8x1xf32>
      %c0_21 = arith.constant 0 : index
      %c0_22 = arith.constant 0 : index
      %44 = vector.load %arg9[%c0_21, %c0_22] : memref<8x1xf32, #tpu.memory_space<vmem>>, vector<8x1xf32>
      tpu.vector_store %arg9[%c0_21, %c0_22], %43 {strides = array<i32>} : memref<8x1xf32, #tpu.memory_space<vmem>>, vector<8x1xf32>,
      %c0_23 = arith.constant 0 : index
      %c0_24 = arith.constant 0 : index
      %45 = vector.load %arg10[%c0_23, %c0_24] : memref<8x128xf32, #tpu.memory_space<vmem>>, vector<8x128xf32>
      %46 = vector.broadcast %35 : vector<8x1xf32> to vector<8x128xf32>
      %47 = arith.mulf %46, %45 : vector<8x128xf32>
      %cst_25 = arith.constant dense<0.000000e+00> : vector<8x128xf32>
      %48 = tpu.matmul %38, %21, %cst_25 {dimension_numbers = #tpu.dot_dimension_numbers<[1], [0], [0], [1], [0, 0, 1, 1], [], []>} : vector<8x8xf32>, vector<8x128xf32>, vector<8x128xf32> -> vector<8x128xf32>
      %49 = arith.addf %47, %48 : vector<8x128xf32>
      %c0_26 = arith.constant 0 : index
      %c0_27 = arith.constant 0 : index
      %50 = vector.load %arg10[%c0_26, %c0_27] : memref<8x128xf32, #tpu.memory_space<vmem>>, vector<8x128xf32>
      tpu.vector_store %arg10[%c0_26, %c0_27], %49 {strides = array<i32>} : memref<8x128xf32, #tpu.memory_space<vmem>>, vector<8x128xf32>,
      %c0_28 = arith.constant 0 : index
      %c0_29 = arith.constant 0 : index
      %51 = vector.load %arg8[%c0_28, %c0_29] : memref<8x1xf32, #tpu.memory_space<vmem>>, vector<8x1xf32>
      tpu.vector_store %arg8[%c0_28, %c0_29], %33 {strides = array<i32>} : memref<8x1xf32, #tpu.memory_space<vmem>>, vector<8x1xf32>,
    } else {
    }
    %c0_i32_3 = arith.constant 0 : i32
    %11 = arith.cmpi eq, %arg2, %c0_i32_3 : i32
    %12 = arith.extui %11 : i1 to i32
    %c0_i32_4 = arith.constant 0 : i32
    %13 = arith.cmpi ne, %12, %c0_i32_4 : i32
    scf.if %13 {
      %c0 = arith.constant 0 : index
      %c0_5 = arith.constant 0 : index
      %14 = vector.load %arg10[%c0, %c0_5] : memref<8x128xf32, #tpu.memory_space<vmem>>, vector<8x128xf32>
      %c0_6 = arith.constant 0 : index
      %c0_7 = arith.constant 0 : index
      %15 = vector.load %arg9[%c0_6, %c0_7] : memref<8x1xf32, #tpu.memory_space<vmem>>, vector<8x1xf32>
      %16 = vector.broadcast %15 : vector<8x1xf32> to vector<8x128xf32>
      %17 = arith.divf %14, %16 : vector<8x128xf32>
      %c0_8 = arith.constant 0 : index
      %c0_9 = arith.constant 0 : index
      %c0_10 = arith.constant 0 : index
      %18 = vector.load %arg7[%c0_8, %c0_9, %c0_10] : memref<1x8x128xf32, #tpu.memory_space<vmem>>, vector<1x8x128xf32>
      %19 = vector.shape_cast %18 : vector<1x8x128xf32> to vector<8x128xf32>
      %20 = vector.shape_cast %17 : vector<8x128xf32> to vector<1x8x128xf32>
      tpu.vector_store %arg7[%c0_8, %c0_9, %c0_10], %20 {strides = array<i32>} : memref<1x8x128xf32, #tpu.memory_space<vmem>>, vector<1x8x128xf32>,
    } else {
    }
    return
  }
  func.func @transform_0(%arg0: i32, %arg1: i32, %arg2: i32, %arg3: memref<2xi32, #tpu.memory_space<smem>>) -> (i32, i32, i32) {
    %c0_i32 = arith.constant 0 : i32
    %c0_i32_0 = arith.constant 0 : i32
    return %arg0, %arg1, %c0_i32 : i32, i32, i32
  }
  func.func @transform_1(%arg0: i32, %arg1: i32, %arg2: i32, %arg3: memref<2xi32, #tpu.memory_space<smem>>) -> (i32, i32, i32) {
    %c0_i32 = arith.constant 0 : i32
    %c0_i32_0 = arith.constant 0 : i32
    return %arg0, %arg2, %c0_i32 : i32, i32, i32
  }
  func.func @transform_2(%arg0: i32, %arg1: i32, %arg2: i32, %arg3: memref<2xi32, #tpu.memory_space<smem>>) -> (i32, i32, i32) {
    %c0_i32 = arith.constant 0 : i32
    %c0_i32_0 = arith.constant 0 : i32
    return %arg0, %arg2, %c0_i32 : i32, i32, i32
  }
  func.func @transform_3(%arg0: i32, %arg1: i32, %arg2: i32, %arg3: memref<2xi32, #tpu.memory_space<smem>>) -> (i32, i32, i32) {
    %c0_i32 = arith.constant 0 : i32
    %c0_i32_0 = arith.constant 0 : i32
    return %arg0, %arg1, %c0_i32 : i32, i32, i32
  }
}

</mosaic_0001>

<bundles_post_ra>
// kernel: tpu_custom_call.1
= control target key start
LH: loop header
LB: loop body
LE: loop exit
PB: predicated region body
PF: predicated region fallthrough
CT: control target
= control target key end

     0   :  { %s876_s18 = smov [#allocation6]   ;;  %s1079_s0 = inlined_call_operand.hbm [shape: s32[2], index: 0, kind: input, shape index: {}]   ;;  %s1080_s1 = inlined_call_operand.hbm [shape: f32[2,8,128], index: 1, kind: input, shape index: {}]   ;;  %s1081_s2 = inlined_call_operand.hbm [shape: f32[2,8,128], index: 2, kind: input, shape index: {}]   ;;  %s1082_s3 = inlined_call_operand.hbm [shape: f32[2,8,128], index: 3, kind: input, shape index: {}]   ;;  %s1083_s4 = inlined_call_operand.hbm [shape: f32[2,8,128], index: 4, kind: output, shape index: {}]  }
   0x1   :  { %1086 = sst [smem:[#allocation21_spill]] %s1081_s2  ;;  %s10_s17 = sshll.u32 %s1079_s0, 4  ;;  %s11_s17 = int_to_ptr.hbm [resolvable:$true] %s10_s17 }
   0x2   :  { %13 = dma.hbm_to_smem %s11_s17, 16, %s876_s18, [#allocation5] }
   0x3   :  { %838 = dma.done.wait [#allocation5], 16 }
   0x4   :  { %839 = vsyncadd [#allocation5], 4294967280 }
   0x5   :  { %16 = sfence }
   0x6   :  { %17 = vsyncpa [#allocation8], 0 }
   0x7   :  { %19 = vsyncpa [#allocation8 + $0x1], 0 }
   0x8   :  { %20 = vsyncpa [#allocation11], 0 }
   0x9   :  { %22 = vsyncpa [#allocation11 + $0x1], 0 }
   0xa   :  { %23 = vsyncpa [#allocation9], 0 }
   0xb   :  { %25 = vsyncpa [#allocation9 + $0x1], 0  ;;  %s909_s19 = smov 0   ;;  %s911_s20 = smov 0  }
   0xc   :  { %s913_s21 = smov 0   ;;  %s915_s22 = smov 0  }
   0xd   :  { %s917_s0 = smov 0   ;;  %s919_s23 = smov 0  }
   0xe LB: > { %1087 = sst [smem:[#allocation18_spill]] %s870_s0  ;;  %s940_s24 = sadd.s32 4294967295, %s874_s23   ;;  %s874_s23 = sphi %s919_s23, %s31_s23   ;;  %s870_s0 = sphi %s917_s0, %s1103_s0   ;;  %s866_s22 = sphi %s915_s22, %s1098_s22   ;;  %s862_s21 = sphi %s913_s21, %s1102_s21   ;;  %s858_s20 = sphi %s911_s20, %s1101_s20   ;;  %s854_s19 = sphi %s909_s19, %s1100_s19  }
   0xf   : > { %s579_s25 = sadd.s32 4294967294, %s874_s23   ;;  %s50_s26 = sadd.s32 1, %s870_s0 }
  0x10   : > { %s59_s27 = sadd.s32 1, %s862_s21  ;;  %p52_p0 = scmp.ge.s32.totalorder %s50_s26, 2 }
  0x11   : > { %p66_p1 = scmp.ne.s32.totalorder %s862_s21, %s858_s20  ;;  %p67_p2 = scmp.eq.s32.totalorder %s874_s23, 0 }
  0x12   : > { %p72_p3 = scmp.ne.s32.totalorder %s858_s20, %s854_s19  ;;  %s1105_s26 = smov (%p52_p0, %s50_s26), 0 }
  0x13   : > { %1088 = sst [smem:[#allocation19_spill]] %s1105_s26  ;;  %p952_p4 = por %p67_p2, %p66_p1 }
  0x14   : > { %p73_p5 = scmp.eq.s32.totalorder %s940_s24, 0  ;;  %s54_s29 = ssub.s32 %s870_s0, %s1105_s26 }
  0x15   : > { %p154_p6 = scmp.eq.s32.totalorder %s940_s24, 1  ;;  %p57_p7 = scmp.eq.s32.totalorder %s54_s29, 0 }
  0x16   : > { %p960_p8 = por %p73_p5, %p72_p3  ;;  %p160_p10 = scmp.eq.s32.totalorder %s579_s25, 1 }
  0x17   : > { %p964_p9 = por %p154_p6, %p66_p1  ;;  %p581_p12 = scmp.ge.s32.totalorder %s874_s23, 2 }
  0x18   : > { %s969_s6 = scalar_select %p57_p7, %s862_s21, %s59_s27  }
  0x19   : > { %p971_p11 = por %p160_p10, %p72_p3  ;;  %p620_p13 = scmp.lt.s32.totalorder %s874_s23, 2 }
  0x1a   : > { %1092 = sst [smem:[#allocation20_spill]] %s969_s6  ;;  %s180_s8 = sand.u32 1, %s862_s21  }
  0x1b   : > { %s582_s9 = sshll.u32 %s180_s8, 3  ;;  %s583_s10 = sshll.u32 %s870_s0, 3 }
  0x1c   : > { %p981_p0 = pnand %p620_p13, %p952_p4  ;;  %s200_s12 = sand.u32 1, %s874_s23  }
  0x1d   : > { %s1095_s2 = sld [smem:[#allocation21_spill]]  ;;  %s204_s17 = scalar_lea.vmem [#allocation10], %s582_s9 }
  0x1e   : > { %s213_s18 = sshll.u32 %s204_s17, 4  ;;  %s201_s25 = scalar_lea.sflag [#allocation11], %s200_s12  ;;  %s214_s18 = int_to_ptr.vmem [resolvable:$true] %s213_s18 }
  0x1f   : > { %p588_p1 = scmp.ge.s32.totalorder %s874_s23, 1  ;;  %p238_p2 = scmp.lt.s32.totalorder %s874_s23, 3 }
  0x20   : > { %s189_s13 = scalar_lea.hbm %s1080_s1, %s583_s10  ;;  %s181_s17 = scalar_lea.sflag [#allocation8], %s180_s8 }
  0x21   : > { %p993_p3 = pnand %p588_p1, %p238_p2  ;;  %s191_s14 = sshll.u32 %s189_s13, 4  ;;  %s192_s14 = int_to_ptr.hbm [resolvable:$true] %s191_s14 }
  0x22   : > { %s224_s0 = scalar_lea.vmem [#allocation12], %s582_s9  ;;  %s1010_s28 = sand.u32 (!%p993_p3), 1, %s858_s20  }
  0x23   : > { %s209_s15 = scalar_lea.hbm %s1095_s2, %s583_s10  ;;  %s233_s6 = sshll.u32 %s224_s0, 4  ;;  %s234_s6 = int_to_ptr.vmem [resolvable:$true] %s233_s6 }
  0x24   : > { %s211_s16 = sshll.u32 %s209_s15, 4  ;;  %s184_s15 = scalar_lea.vmem [#allocation7], %s582_s9  ;;  %s212_s16 = int_to_ptr.hbm [resolvable:$true] %s211_s16 }
  0x25   : > { %612 = dma.hbm_to_vmem [thread:$0]  (!%p981_p0), %s212_s16, 128, %s214_s18, %s201_s25  }
  0x26   : > { %s193_s2 = sshll.u32 %s184_s15, 4  ;;  %s229_s18 = scalar_lea.hbm %s1082_s3, %s583_s10  ;;  %s194_s2 = int_to_ptr.vmem [resolvable:$true] %s193_s2 }
  0x27   : > { %609 = dma.hbm_to_vmem [thread:$0]  (!%p981_p0), %s192_s14, 128, %s194_s2, %s181_s17  }
  0x28   : > { %s231_s26 = sshll.u32 %s229_s18, 4  ;;  %242 = sbr.rel (%p993_p3) target bundleno = 702 (0x2be), region = 32  ;;  %s232_s26 = int_to_ptr.hbm [resolvable:$true] %s231_s26 }
  0x29   : > { %615 = dma.hbm_to_vmem [thread:$0]  (!%p981_p0), %s232_s26, 128, %s234_s6, %s201_s25  }
  0x2a   : > { %s1013_s2 = sshll.u32 (!%p993_p3), %s1010_s28, 3  ;;  %s245_s8 = scalar_lea.sflag (!%p993_p3), [#allocation8], %s1010_s28 }
  0x2b   : > { %s248_s10 = scalar_lea.vmem (!%p993_p3), [#allocation7], %s1013_s2 }
  0x2d   : > { %841 = dma.done.wait (%p960_p8), %s245_s8, 128  }
  0x2e   : > { %843 = vsyncadd (%p960_p8), %s245_s8, 4294967168  ;;  %s254_s0 = sand.u32 1, %s940_s24   ;;  %s258_s6 = scalar_lea.vmem [#allocation10], %s1013_s2 }
  0x2f   : > { %s255_s26 = scalar_lea.sflag [#allocation11], %s254_s0 }
  0x30   : > { %845 = dma.done.wait (%p960_p8), %s255_s26, 256  }
  0x31   : > { %847 = vsyncadd (%p960_p8), %s255_s26, 4294967040  ;;  %vm307_vm0 = vcmask 7168   ;;  %s311_s9 = sld [smem:[#allocation6 + %s866_s22]]  ;;  %v877_v0 = vmov -inf   ;;  %v878_v1 = vmov 0.0   ;;  %s268_s24 = scalar_lea.vmem [#allocation12], %s1013_s2 }
  0x32   : > { %308 = vst.msk [vmem:[#allocation2] sm:$0xff] %vm307_vm0, %v877_v0  ;;  %s301_s11 = scalar_lea.vmem [#allocation13], %s1013_s2 }
  0x33   : > { %309 = vst.msk [vmem:[#allocation3] sm:$0xff] %vm307_vm0, %v878_v1 }
  0x34   : > { %310 = vst [vmem:[#allocation4] sm:$0xff] %v878_v1 }
  0x37   : > { %p312_p4 = scmp.gt.s32.totalorder %s311_s9, 0  ;;  %p313_p5 = scmp.eq.s32.totalorder %s311_s9, 0 }
  0x39   : > { %p314_p6 = por %p313_p5, %p312_p4 }
  0x3a   : > { %v320_v2 = vld [vmem:[%s258_s6] sm:$0xff] (%p314_p6)  ;;  %v318_v3 = vld [vmem:[%s248_s10] sm:$0xff] (%p314_p6)  ;;  %v342_v5 = vlaneseq (%p314_p6)  ;;  %v346_v7 = vstv (%p314_p6), %s311_s9  ;;  %vm350_vm2 = vcmask (%p314_p6), 64512   ;;  %v879_v11 = vmov (%p314_p6), 0  }
  0x3b   : > { %317 = sbr.rel (!%p314_p6) target bundleno = 563 (0x233), region = 52  ;;  %337 = vmatpush.xpose.msra.mxu0 (%p314_p6), %v320_v2  ;;  %v319_v4 = vmul.f32 (%p314_p6), 0.17677669, %v318_v3  ;;  %675 = vset.pattern.permute.xlu0 (%p314_p6), %v879_v11  ;;  %v349_v12 = vld [vmem:[#allocation2] sm:$0xff] (%p314_p6)  ;;  %v366_v25 = vld [vmem:[#allocation3] sm:$0xff] (%p314_p6)  ;;  %v374_v29 = vld [vmem:[#allocation4] sm:$0xff] (%p314_p6) }
  0x3c   : > { %v343_v6 = vand.u32 (%p314_p6), 127, %v342_v5  ;;  %676 = vset.pattern.permute.xlu1 (%p314_p6), %v879_v11  ;;  %v321_v18 = vld [vmem:[%s268_s24] sm:$0xff] (%p314_p6) }
  0x3d   : > { %399 = vmatpush.msra.mxu1 (%p314_p6), %v321_v18 }
  0x3e   : > { %338 = vmatmul.f32.vlgmr.msra.gmra.mxu0 (%p314_p6), %v319_v4  ;;  %vm347_vm1 = vcmp.lt.s32.totalorder (%p314_p6), %v343_v6, %v346_v7 }
  0xbb   : > { %v339_v8 = vpop.f32.mrf.mxu0 }
  0xbc   : > { %v348_v9 = vsel %vm347_vm1, %v339_v8, -1000000.0 }
  0xbd   : > { %v351_v10 = vsel %vm350_vm2, %v348_v9, -inf }
  0xbe   : > { %352 = vmax.xlane.f32.xlu0 %v351_v10 }
 0x131   : > { %v353_v13 = vpop.xlane.xlu0 %352 }
 0x132   : > { %v354_v14 = vmax.f32 %v349_v12, %v353_v13 }
 0x134   : > { %v355_v15 = vsub.f32 %v349_v12, %v354_v14  ;;  %406 = vst.msk [vmem:[#allocation2] sm:$0xff] %vm307_vm0, %v354_v14  ;;  %360 = vperm.xlu0 %675, %v354_v14  }
 0x136   : > { %v356_v16 = vmul.f32 1.442695, %v355_v15 }
 0x138   : > { %677 = vpow2.f32 %v356_v16 }
 0x13e   : > { %v678_v17 = vpop.eup %677 }
 0x13f   : > { %377 = vperm.xlu1 %676, %v678_v17   ;;  %v367_v26 = vmul.f32 %v678_v17, %v366_v25 }
 0x1a6   : > { %v361_v19 = vpop.permute.xlu0 %360 }
 0x1a7   : > { %v363_v20 = vsub.f32 %v348_v9, %v361_v19 }
 0x1a9   : > { %v364_v21 = vmul.f32 1.442695, %v363_v20 }
 0x1ab   : > { %679 = vpow2.f32 %v364_v21 }
 0x1b1   : > { %v680_v22 = vpop.eup %679  ;;  %v378_v24 = vpop.permute.xlu1 %377 }
 0x1b2   : > { %593 = vmatmul.msk.f32.vlgmr.msra.gmra.mxu1 %vm350_vm2, %v680_v22  ;;  %v368_v23 = vsel %vm350_vm2, %v680_v22, 0.0  ;;  %v380_v30 = vmul.f32 %v378_v24, %v374_v29 }
 0x1b3   : > { %369 = vadd.xlane.f32.xlu1 %v368_v23 }
 0x226   : > { %v370_v27 = vpop.xlane.xlu1 %369 }
 0x227   : > { %v371_v28 = vadd.f32 %v370_v27, %v367_v26 }
 0x229   : > { %373 = vst.msk [vmem:[#allocation3] sm:$0xff] %vm307_vm0, %v371_v28 }
 0x22f   : > { %v401_v31 = vpop.f32.mrf.mxu1 }
 0x230   : > { %v404_v32 = vadd.f32 %v401_v31, %v380_v30 }
 0x232   : > { %405 = vst [vmem:[#allocation4] sm:$0xff] %v404_v32 }
 0x233 PF: > { %v411_v33 = vld [vmem:[#allocation3] sm:$0xff]  ;;  %v880_v34 = vmov 0   ;;  %s595_s30 = sshll.u32 %s866_s22, 3  ;;  %s447_s13 = sshll.u32 %s301_s11, 4  ;;  %s448_s13 = int_to_ptr.vmem [resolvable:$true] %s447_s13 }
 0x234   : > { %681 = vset.pattern.permute.xlu0 %v880_v34  ;;  %s445_s29 = scalar_lea.hbm %s1083_s4, %s595_s30  ;;  %s434_s14 = scalar_lea.sflag [#allocation9], %s1010_s28 }
 0x235   : > { %414 = vperm.xlu0 %681, %v411_v33   ;;  %s449_s22 = sshll.u32 %s445_s29, 4  ;;  %s806_s18 = scalar_lea.hbm %s1083_s4, 16  ;;  %s450_s22 = int_to_ptr.hbm [resolvable:$true] %s449_s22 }
 0x236   : > { %s800_s15 = sshra.s32 %s450_s22, 4  ;;  %s801_s15 = int_to_ptr.hbm [resolvable:$true] %s800_s15 }
 0x237   : > { %s802_s17 = scalar_lea.hbm %s801_s15, 8  ;;  %p807_p13 = scmp.lt.s32.totalorder %s801_s15, %s1083_s4 }
 0x238   : > { %p803_p7 = scmp.ne.s32.totalorder %s801_s15, %s802_s17  ;;  %p808_p0 = scmp.lt.s32.totalorder %s806_s18, %s802_s17 }
 0x239   : > { %v410_v44 = vld [vmem:[#allocation4] sm:$0xff] }
 0x23a   : > { %p804_p8 = pnand %p803_p7, %p964_p9  ;;  %p809_p1 = por %p808_p0, %p807_p13 }
 0x23c   : > { %p805_p10 = pneg %p804_p8 }
 0x23e   : > { %p810_p2 = pnand %p809_p1, %p805_p10 }
 0x2a7   : > { %v415_v35 = vpop.permute.xlu0 %414 }
 0x2a8   : > { %682 = vrcp.f32 %v415_v35  ;;  %v428_v39 = vand.u32 2147483648, %v415_v35  ;;  %v426_v41 = vand.u32 2147483647, %v415_v35  ;;  %vm422_vm4 = vweird.f32 %v415_v35 }
 0x2aa   : > { %v429_v43 = vor.u32 1.1754944e-38, %v428_v39  ;;  %vm427_vm6 = vcmp.eq.f32.partialorder %v426_v41, 8.507059e+37 }
 0x2ae   : > { %v683_v36 = vpop.eup %682 }
 0x2af   : > { %v418_v37 = vmul.f32 %v683_v36, %v415_v35  ;;  %vm423_vm3 = vweird.f32 %v683_v36 }
 0x2b0   : > { %vm424_vm5 = vmor %vm422_vm4, %vm423_vm3 }
 0x2b1   : > { %v419_v38 = vsub.f32 1.0, %v418_v37 }
 0x2b3   : > { %v420_v40 = vmul.f32 %v683_v36, %v419_v38 }
 0x2b5   : > { %v421_v42 = vadd.f32 %v683_v36, %v420_v40 }
 0x2b7   : > { %v425_v45 = vsel %vm424_vm5, %v683_v36, %v421_v42 }
 0x2b8   : > { %v430_v46 = vsel %vm427_vm6, %v429_v43, %v425_v45 }
 0x2b9   : > { %v431_v47 = vmul.f32 %v430_v46, %v410_v44 }
 0x2bb   : > { %432 = vst [vmem:[%s301_s11] sm:$0xff] %v431_v47 }
 0x2bc   : > { %813 = shalt.err (!%p810_p2)
}
 0x2bd   : > { %604 = dma.vmem_to_hbm [thread:$0]  (%p964_p9), %s448_s13, 128, %s450_s22, %s434_s14  }
 0x2be PF: > { %s461_s28 = sand.u32 1, %s854_s19   ;;  %p617_p3 = pnand %p581_p12, %p971_p11 }
 0x2bf   : > { %s462_s2 = scalar_lea.sflag [#allocation9], %s461_s28 }
 0x2c0   : > { %p618_p4 = pneg %p617_p3 }
 0x2c2   : > { %849 = dma.done.wait (%p618_p4), %s462_s2, 128  }
 0x2c3   : > { %851 = vsyncadd (%p618_p4), %s462_s2, 4294967168  ;;  %s31_s23 = sadd.s32 1, %s874_s23   ;;  %s1097_s0 = sld [smem:[#allocation20_spill]] }
 0x2c4   : > { %p28_p5 = scmp.ge.s32.totalorder %s31_s23, 4   ;;  %s1098_s22 = sld [smem:[#allocation18_spill]] }
 0x2c5   : > { %s1099_s5 = sld [smem:[#allocation19_spill]]  ;;  %s1100_s19 = smov %s858_s20 }
 0x2c6   : > { %s1101_s20 = smov %s862_s21 }
 0x2c7   :  { %30 = sbr.rel (!%p28_p5) target bundleno = 14 (0xe), region = 113 }
 0x2c9   : > { %s1102_s21 = smov %s1097_s0 }
 0x2cb   : > { %s1103_s0 = smov %s1099_s5 }
 0x2cc   :  { %468 = vsyncpa [#allocation8], 1 }
 0x2cd   :  { %470 = vsyncpa [#allocation8 + $0x1], 1 }
 0x2ce   :  { %471 = vsyncpa [#allocation11], 1 }
 0x2cf   :  { %473 = vsyncpa [#allocation11 + $0x1], 1 }
 0x2d0   :  { %474 = vsyncpa [#allocation9], 1 }
 0x2d1   :  { %476 = vsyncpa [#allocation9 + $0x1], 1 }

</bundles_post_ra>
